<compile_context>
chip_gen: v7x
topology: tpu7x:2x2x1
jax: 0.10.0
libtpu: 0.0.40
codegen_flags: <defaults>
</compile_context>

<pallas_src>
import functools

import jax
import jax.numpy as jnp
from jax.experimental import pallas as pl
from jax.experimental.pallas import tpu as pltpu


def avg_loss_kernel(x_ref, y_ref, o_ref, *, inv_c):
    # x_ref, y_ref: (..., C, THW) lane-dense VMEM tiles.
    # o_ref:        matching tile with the channel axis (second-to-last of the
    #               inputs) reduced away.
    # Difference in the native dtype (exact for f32, native bf16 on v6e/v7x),
    # square + channel accumulation in f32, single scale by 1/C at the end.
    d = (x_ref[...] - y_ref[...]).astype(jnp.float32)
    acc = jnp.sum(d * d, axis=-2)                      # reduce over channels
    out = acc * jnp.float32(inv_c)                     # compile-time 1/C
    o_ref[...] = out.reshape(o_ref.shape).astype(o_ref.dtype)


def _vmem_plan():
    """(bytes per input block per step, vmem_limit_bytes), generation-aware.

    v5e/v6e have 128 MiB physical VMEM -> bigger blocks; v7x-class (64 MiB)
    or unknown -> stay comfortably under the 32 MiB scoped default even after
    counting double-buffered inputs and the in-kernel f32 temporaries.
    """
    try:
        vmem = pltpu.get_tpu_info().vmem_capacity_bytes
    except Exception:
        vmem = 64 * 1024 * 1024
    if vmem >= 128 * 1024 * 1024:            # v5e / v6e
        return 3 * 1024 * 1024, 64 * 1024 * 1024
    return 2 * 1024 * 1024, 32 * 1024 * 1024  # v7x-class / unknown


def avg_loss(x, y, *, max_block_bytes=None):
    """Pallas implementation of MSELoss(reduction='none')(x, y).mean(dim=1)."""
    assert x.shape == y.shape and x.dtype == y.dtype
    B, C, H, W = x.shape
    HW = H * W
    itemsize = x.dtype.itemsize
    lane = 128

    budget, vmem_limit = _vmem_plan()
    if max_block_bytes is not None:          # test hook / manual override
        budget = max_block_bytes

    xf = x.reshape(B, C, HW)
    yf = y.reshape(B, C, HW)

    hw_round = pl.cdiv(HW, lane) * lane      # lane-aligned spatial extent
    per_sample_bytes = C * hw_round * itemsize
    inv_c = 1.0 / C

    cost = pl.CostEstimate(
        flops=3 * B * C * HW,
        transcendentals=0,
        bytes_accessed=(2 * C + 1) * B * HW * itemsize,
    )
    kernel = functools.partial(avg_loss_kernel, inv_c=inv_c)

    # ---------------------------------------------------------------------
    # Case A: whole spatial extent fits in one lane tile -> block the batch.
    #   in  block: (TB, C, hw_round)   out block: (TB, hw_round)
    # TB is a multiple of 8 (dense, unmasked output stores) or equal to B.
    # ---------------------------------------------------------------------
    if per_sample_bytes <= budget:
        thw = hw_round
        max_tb = max(1, budget // per_sample_bytes)
        if max_tb >= B:
            tb = B
            # Keep >= 2 grid steps when possible so v7x's 2 TensorCores both
            # get work (only if the split keeps the block sublane-aligned).
            if B > 1 and (B // 2) % 8 == 0:
                tb = B // 2
        elif max_tb >= 8:
            tb = (max_tb // 8) * 8           # sublane-aligned batch block
        else:
            tb = 0                           # fall through to Case B

        if tb > 0:
            out = pl.pallas_call(
                kernel,
                out_shape=jax.ShapeDtypeStruct((B, HW), x.dtype),
                grid_spec=pltpu.PrefetchScalarGridSpec(
                    num_scalar_prefetch=0,
                    grid=(pl.cdiv(B, tb),),
                    in_specs=[pl.BlockSpec((tb, C, thw), lambda b: (b, 0, 0))] * 2,
                    out_specs=pl.BlockSpec((tb, thw), lambda b: (b, 0)),
                ),
                compiler_params=pltpu.CompilerParams(
                    dimension_semantics=("parallel",),
                    vmem_limit_bytes=vmem_limit),
                cost_estimate=cost,
            )(xf, yf)
            return out.reshape(B, H, W)

    # ---------------------------------------------------------------------
    # Case B: large spatial extent -> tile H*W per sample.
    #   in  block: (1, C, thw)   out block: (1, 1, thw)
    # (Output second-to-last block dim equals the full dim 1, so the block
    #  shape is always legal; output traffic is only 1/(2C+1) of the total.)
    # ---------------------------------------------------------------------
    thw_cap = (budget // (C * itemsize)) // lane * lane
    thw = max(lane, min(hw_round, thw_cap))
    grid = (B, pl.cdiv(HW, thw))

    out = pl.pallas_call(
        kernel,
        out_shape=jax.ShapeDtypeStruct((B, 1, HW), x.dtype),
        grid_spec=pltpu.PrefetchScalarGridSpec(
            num_scalar_prefetch=0,
            grid=grid,
            in_specs=[pl.BlockSpec((1, C, thw), lambda b, t: (b, 0, t))] * 2,
            out_specs=pl.BlockSpec((1, 1, thw), lambda b, t: (b, 0, t)),
        ),
        compiler_params=pltpu.CompilerParams(
            dimension_semantics=("parallel", "parallel"),
            vmem_limit_bytes=vmem_limit),
        cost_estimate=cost,
    )(xf, yf)
    return out[:, 0, :].reshape(B, H, W)


if __name__ == "__main__":
    key = jax.random.PRNGKey(0)
    kx, ky = jax.random.split(key)

    # Primary test: shapes from the spec (B, C, H, W) -> batch-blocked path.
    B, C, H, W = 2, 4, 16, 16
    x = jax.random.normal(kx, (B, C, H, W), dtype=jnp.float32)
    y = jax.random.normal(ky, (B, C, H, W), dtype=jnp.float32)

    out = avg_loss(x, y)
    jax.block_until_ready(out)

    ref = jnp.mean((x - y) ** 2, axis=1)  # MSELoss(reduction='none').mean(dim=1)
    assert out.shape == (B, H, W), out.shape
    assert jnp.allclose(out, ref, atol=1e-6, rtol=1e-5), "mismatch vs reference"

    # Ragged spatial extent (H*W not a multiple of 128) exercising the
    # partial-lane-block path with NO wrapper padding.
    B2, C2, H2, W2 = 2, 3, 10, 10
    k2x, k2y = jax.random.split(jax.random.PRNGKey(1))
    x2 = jax.random.normal(k2x, (B2, C2, H2, W2), dtype=jnp.float32)
    y2 = jax.random.normal(k2y, (B2, C2, H2, W2), dtype=jnp.float32)
    out2 = avg_loss(x2, y2)
    jax.block_until_ready(out2)
    ref2 = jnp.mean((x2 - y2) ** 2, axis=1)
    assert out2.shape == (B2, H2, W2), out2.shape
    assert jnp.allclose(out2, ref2, atol=1e-6, rtol=1e-5), "mismatch (ragged) vs reference"

    # Force the spatial-tiling (Case B) path with a tiny per-step byte budget
    # so both code paths are compile- and correctness-checked at small shapes.
    out3 = avg_loss(x2, y2, max_block_bytes=512)
    jax.block_until_ready(out3)
    assert out3.shape == (B2, H2, W2), out3.shape
    assert jnp.allclose(out3, ref2, atol=1e-6, rtol=1e-5), "mismatch (tiled) vs reference"

    print("KERNEL_OK")
</pallas_src>

<mosaic_0001>
module attributes {stable_mosaic.version = 11 : i64} {
  func.func @avg_loss_kernel(%arg0: i32, %arg1: memref<2x4x256xf32, #tpu.memory_space<vmem>>, %arg2: memref<2x4x256xf32, #tpu.memory_space<vmem>>, %arg3: memref<2x256xf32, #tpu.memory_space<vmem>>) attributes {dimension_semantics = [#tpu.dimension_semantics<parallel>], iteration_bounds = array<i64: 1>, scalar_prefetch = 0 : i64, scratch_operands = 0 : i64, tpu.core_type = #tpu.core_type<tc>, window_params = [{transform_indices = @transform_0, window_bounds = array<i64: 2, 4, 256>}, {transform_indices = @transform_1, window_bounds = array<i64: 2, 4, 256>}, {transform_indices = @transform_2, window_bounds = array<i64: 2, 256>}]} {
    %c0 = arith.constant 0 : index
    %c0_0 = arith.constant 0 : index
    %c0_1 = arith.constant 0 : index
    %0 = vector.load %arg1[%c0, %c0_0, %c0_1] : memref<2x4x256xf32, #tpu.memory_space<vmem>>, vector<2x4x256xf32>
    %c0_2 = arith.constant 0 : index
    %c0_3 = arith.constant 0 : index
    %c0_4 = arith.constant 0 : index
    %1 = vector.load %arg2[%c0_2, %c0_3, %c0_4] : memref<2x4x256xf32, #tpu.memory_space<vmem>>, vector<2x4x256xf32>
    %2 = arith.subf %0, %1 : vector<2x4x256xf32>
    %3 = arith.mulf %2, %2 : vector<2x4x256xf32>
    %cst = arith.constant dense<0.000000e+00> : vector<2x256xf32>
    %4 = vector.multi_reduction <add>, %3, %cst [1] : vector<2x4x256xf32> to vector<2x256xf32>
    %cst_5 = arith.constant 2.500000e-01 : f32
    %5 = vector.broadcast %cst_5 : f32 to vector<2x256xf32>
    %6 = arith.mulf %4, %5 : vector<2x256xf32>
    %c0_6 = arith.constant 0 : index
    %c0_7 = arith.constant 0 : index
    %7 = vector.load %arg3[%c0_6, %c0_7] : memref<2x256xf32, #tpu.memory_space<vmem>>, vector<2x256xf32>
    tpu.vector_store %arg3[%c0_6, %c0_7], %6 {strides = array<i32>} : memref<2x256xf32, #tpu.memory_space<vmem>>, vector<2x256xf32>,
    return
  }
  func.func @transform_0(%arg0: i32) -> (i32, i32, i32) {
    %c0_i32 = arith.constant 0 : i32
    %c0_i32_0 = arith.constant 0 : i32
    %c0_i32_1 = arith.constant 0 : i32
    return %arg0, %c0_i32, %c0_i32_0 : i32, i32, i32
  }
  func.func @transform_1(%arg0: i32) -> (i32, i32, i32) {
    %c0_i32 = arith.constant 0 : i32
    %c0_i32_0 = arith.constant 0 : i32
    %c0_i32_1 = arith.constant 0 : i32
    return %arg0, %c0_i32, %c0_i32_0 : i32, i32, i32
  }
  func.func @transform_2(%arg0: i32) -> (i32, i32) {
    %c0_i32 = arith.constant 0 : i32
    %c0_i32_0 = arith.constant 0 : i32
    return %arg0, %c0_i32 : i32, i32
  }
}

</mosaic_0001>

<bundles_post_ra>
// kernel: tpu_custom_call.1
= control target key start
LH: loop header
LB: loop body
LE: loop exit
PB: predicated region body
PF: predicated region fallthrough
CT: control target
= control target key end

     0   :  { %7 = vsyncpa [#allocation3], 0  ;;  %s273_s0 = inlined_call_operand.hbm [shape: f32[2,4,256], index: 0, kind: input, shape index: {}]   ;;  %s274_s1 = inlined_call_operand.hbm [shape: f32[2,4,256], index: 1, kind: input, shape index: {}]   ;;  %s275_s2 = inlined_call_operand.hbm [shape: f32[2,256], index: 2, kind: output, shape index: {}]  }
   0x1   :  { %8 = vsyncpa [#allocation6], 0 }
   0x2   :  { %9 = vsyncpa [#allocation4], 0  ;;  %s216_s9 = smov [#allocation2]   ;;  %s144_s13 = scalar_lea.hbm %s273_s0, 256 }
   0x3   :  { %s15_s10 = sshll.u32 %s216_s9, 4  ;;  %p145_p0 = scmp.ne.s32.totalorder %s273_s0, %s144_s13  ;;  %s16_s10 = int_to_ptr.vmem [resolvable:$true] %s15_s10 }
   0x4   :  { %p148_p1 = scmp.lt.u32.totalorder %s144_s13, %s273_s0 }
   0x6   :  { %p150_p2 = pnand %p148_p1, %p145_p0 }
   0x8   :  { %153 = shalt.err (!%p150_p2)
}
   0x9   :  { %s154_s18 = scalar_lea.vmem %s16_s10, 256  ;;  %p159_p4 = scmp.lt.s32.totalorder %s16_s10, %s16_s10 }
   0xa   :  { %p155_p3 = scmp.ne.s32.totalorder %s16_s10, %s154_s18  ;;  %p160_p5 = scmp.lt.s32.totalorder %s154_s18, %s154_s18 }
   0xc   :  { %p161_p6 = por %p160_p5, %p159_p4 }
   0xe   :  { %p162_p7 = pnand %p161_p6, %p155_p3 }
  0x10   :  { %165 = shalt.err (!%p162_p7)
}
  0x11   :  { %s217_s19 = smov 128   ;;  %s218_s20 = smov 8  }
  0x12   :  { %21 = dma.hbm_to_vmem [thread:$0]  %s273_s0, 256, %s16_s10, [#allocation3], %s217_s19, %s217_s19, %s218_s20  }
  0x13   :  { %s219_s23 = smov [#allocation5]   ;;  %s166_s27 = scalar_lea.hbm %s274_s1, 256 }
  0x14   :  { %s27_s24 = sshll.u32 %s219_s23, 4  ;;  %p167_p8 = scmp.ne.s32.totalorder %s274_s1, %s166_s27  ;;  %s28_s24 = int_to_ptr.vmem [resolvable:$true] %s27_s24 }
  0x15   :  { %p170_p9 = scmp.lt.u32.totalorder %s166_s27, %s274_s1 }
  0x17   :  { %p172_p10 = pnand %p170_p9, %p167_p8 }
  0x19   :  { %175 = shalt.err (!%p172_p10)
}
  0x1a   :  { %s176_s4 = scalar_lea.vmem %s28_s24, 256  ;;  %p181_p12 = scmp.lt.s32.totalorder %s28_s24, %s28_s24 }
  0x1b   :  { %p177_p11 = scmp.ne.s32.totalorder %s28_s24, %s176_s4  ;;  %p182_p13 = scmp.lt.s32.totalorder %s176_s4, %s176_s4 }
  0x1d   :  { %p183_p0 = por %p182_p13, %p181_p12 }
  0x1f   :  { %p184_p1 = pnand %p183_p0, %p177_p11 }
  0x21   :  { %187 = shalt.err (!%p184_p1)
}
  0x22   :  { %33 = dma.hbm_to_vmem [thread:$0]  %s274_s1, 256, %s28_s24, [#allocation6], %s217_s19, %s217_s19, %s218_s20  }
  0x23   :  { %210 = dma.done.wait [#allocation3], 256  }
  0x24   :  { %211 = vsyncadd [#allocation3], 4294967040 }
  0x25   :  { %212 = dma.done.wait [#allocation6], 256  }
  0x26   :  { %213 = vsyncadd [#allocation6], 4294967040  ;;  %v40_v0 = vld [vmem:[#allocation2] sm:$0xff]  ;;  %v41_v1 = vld [vmem:[#allocation2 + $0x8] sm:$0xff]  ;;  %vm54_vm0 = vcmask 1043456   ;;  %v95_v30 = vlaneseq  ;;  %vm112_vm1 = vcmask 1041409  }
  0x27   :  { %v42_v2 = vld [vmem:[#allocation5] sm:$0xff]  ;;  %v43_v3 = vld [vmem:[#allocation5 + $0x8] sm:$0xff]  ;;  %v220_v28 = vmov 1983009808   ;;  %vm114_vm2 = vcmask 1043459   ;;  %vm116_vm3 = vcmask 1045509  }
  0x28   :  { %v44_v4 = vsub.f32 %v40_v0, %v42_v2  ;;  %v45_v5 = vsub.f32 %v41_v1, %v43_v3  ;;  %v93_v29 = vunpack.c.l.s4 %v220_v28  ;;  %v96_v40 = vshrl.u32 %v95_v30, 7  ;;  %s221_s1 = smov [#allocation7]  }
  0x29   :  { %s128_s6 = sshll.u32 %s221_s1, 4  ;;  %vm118_vm4 = vcmask 1047559   ;;  %s129_s6 = int_to_ptr.vmem [resolvable:$true] %s128_s6 }
  0x2a   :  { %v46_v6 = vmul.f32 %v44_v4, %v44_v4  ;;  %v47_v7 = vmul.f32 %v45_v5, %v45_v5  ;;  %v94_v39 = vunpack.c.0.s8 %v93_v29  ;;  %s188_s7 = scalar_lea.vmem %s129_s6, 64  ;;  %p193_p3 = scmp.lt.s32.totalorder %s129_s6, %s129_s6 }
  0x2b   :  { %p189_p2 = scmp.ne.s32.totalorder %s129_s6, %s188_s7  ;;  %p194_p4 = scmp.lt.s32.totalorder %s188_s7, %s188_s7 }
  0x2c   :  { %v50_v8 = vcombine.high %v46_v6, %v46_v6  ;;  %v55_v9 = vsel %vm54_vm0, %v46_v6, 0.0  ;;  %v51_v10 = vcombine.high %v47_v7, %v47_v7  ;;  %v69_v12 = vsel %vm54_vm0, %v47_v7, 0.0 }
  0x2d   :  { %v56_v11 = vrot.slane %v55_v9, 4  ;;  %v70_v14 = vrot.slane %v69_v12, 4  ;;  %v97_v47 = vsub.s32 %v94_v39, %v96_v40  ;;  %p195_p5 = por %p194_p4, %p193_p3 }
  0x2e   :  { %v62_v13 = vsel %vm54_vm0, %v50_v8, 0.0  ;;  %v76_v17 = vsel %vm54_vm0, %v51_v10, 0.0 }
  0x2f   :  { %v57_v15 = vadd.f32 %v56_v11, %v55_v9  ;;  %v63_v16 = vrot.slane %v62_v13, 4  ;;  %v71_v18 = vadd.f32 %v70_v14, %v69_v12  ;;  %v77_v19 = vrot.slane %v76_v17, 4  ;;  %p196_p6 = pnand %p195_p5, %p189_p2 }
  0x31   :  { %v58_v20 = vrot.slane %v57_v15, 2  ;;  %v64_v21 = vadd.f32 %v63_v16, %v62_v13  ;;  %v72_v22 = vrot.slane %v71_v18, 2  ;;  %v78_v23 = vadd.f32 %v77_v19, %v76_v17 }
  0x33   :  { %v59_v24 = vadd.f32 %v58_v20, %v57_v15  ;;  %v65_v25 = vrot.slane %v64_v21, 2  ;;  %v73_v26 = vadd.f32 %v72_v22, %v71_v18  ;;  %v79_v27 = vrot.slane %v78_v23, 2 }
  0x35   :  { %v60_v31 = vrot.slane %v59_v24, 1  ;;  %v66_v32 = vadd.f32 %v65_v25, %v64_v21  ;;  %v74_v33 = vrot.slane %v73_v26, 1  ;;  %v80_v34 = vadd.f32 %v79_v27, %v78_v23 }
  0x37   :  { %v61_v35 = vadd.f32 %v60_v31, %v59_v24  ;;  %v67_v36 = vrot.slane %v66_v32, 1  ;;  %v75_v37 = vadd.f32 %v74_v33, %v73_v26  ;;  %v81_v38 = vrot.slane %v80_v34, 1 }
  0x39   :  { %v68_v41 = vadd.f32 %v67_v36, %v66_v32  ;;  %v83_v42 = vmul.f32 0.25, %v61_v35  ;;  %v82_v43 = vadd.f32 %v81_v38, %v80_v34  ;;  %v85_v44 = vmul.f32 0.25, %v75_v37 }
  0x3b   :  { %v84_v45 = vmul.f32 0.25, %v68_v41  ;;  %v86_v46 = vmul.f32 0.25, %v82_v43 }
  0x3d   :  { %v91_v48 = vcombine.low %v83_v42, %v84_v45  ;;  %v99_v49 = vcombine.low %v85_v44, %v86_v46 }
  0x3f   :  { %v98_v50 = vrot.slane %v91_v48, %v97_v47  ;;  %v106_v51 = vrot.slane %v99_v49, %v97_v47 }
  0x41   :  { %v111_v52 = vrot.slane %v106_v51, 7 }
  0x43   :  { %v113_v53 = vsel %vm112_vm1, %v111_v52, %v98_v50 }
  0x44   :  { %v115_v54 = vsel %vm114_vm2, %v111_v52, %v113_v53 }
  0x45   :  { %v117_v55 = vsel %vm116_vm3, %v111_v52, %v115_v54 }
  0x46   :  { %v119_v56 = vsel %vm118_vm4, %v111_v52, %v117_v55 }
  0x47   :  { %121 = vst [vmem:[#allocation7] sm:$0xf] %v119_v56 }
  0x48   :  { %199 = shalt.err (!%p196_p6)
}
  0x49   :  { %s200_s10 = scalar_lea.hbm %s275_s2, 64 }
  0x4a   :  { %p201_p7 = scmp.ne.s32.totalorder %s275_s2, %s200_s10  ;;  %p204_p8 = scmp.lt.u32.totalorder %s200_s10, %s275_s2 }
  0x4c   :  { %p206_p9 = pnand %p204_p8, %p201_p7 }
  0x4e   :  { %209 = shalt.err (!%p206_p9)
}
  0x4f   :  { %131 = dma.vmem_to_hbm [thread:$0]  %s129_s6, 64, %s275_s2, [#allocation4]  }
  0x50   :  { %214 = dma.done.wait [#allocation4], 64  }
  0x51   :  { %215 = vsyncadd [#allocation4], 4294967232 }
  0x52   :  { %135 = vsyncpa [#allocation3], 1 }
  0x53   :  { %136 = vsyncpa [#allocation6], 1 }
  0x54   :  { %137 = vsyncpa [#allocation4], 1 }

</bundles_post_ra>
